<compile_context>
chip_gen: v5e
topology: v5e:2x2
jax: 0.10.0
libtpu: 0.0.40
codegen_flags: <defaults>
</compile_context>

<pallas_src>
import jax
import jax.numpy as jnp
from jax import lax
from jax.experimental import pallas as pl
from jax.experimental.pallas import tpu as pltpu


def _cdiv(a: int, b: int) -> int:
    return -(-a // b)


def _vmem_capacity_bytes() -> int:
    """Physical VMEM of the current TPU generation (conservative fallback)."""
    try:
        info = pltpu.get_tpu_info()
        cap = getattr(info, "vmem_capacity_bytes", None)
        if cap:
            return int(cap)
    except Exception:
        pass
    return 64 * 1024 * 1024  # v7x-sized fallback (most restrictive)


def _make_shuffle_kernel(c: int, groups: int, ctile: int, tb: int,
                         unroll_batch: bool):
    cpg = c // groups
    # Output channel c_out reads input channel perm[c_out] (matches PyTorch
    # view->transpose->view exactly).
    perm = [(c_out % groups) * cpg + (c_out // groups) for c_out in range(c)]

    def copy_row(x_ref, o_ref, i):
        # One batch row of the block: gather each ctile-channel output slab in
        # registers, then store it densely (full sublanes x full lanes).
        for t0 in range(0, c, ctile):
            t1 = min(t0 + ctile, c)
            slab = jnp.concatenate(
                [x_ref[pl.ds(i, 1), pl.ds(perm[co], 1), :]
                 for co in range(t0, t1)],
                axis=1)
            o_ref[pl.ds(i, 1), pl.ds(t0, t1 - t0), :] = slab

    def kernel(x_ref, o_ref):
        # x_ref / o_ref: (tb, C, hw_tile) VMEM blocks.
        if unroll_batch:
            for i in range(tb):
                copy_row(x_ref, o_ref, i)
        else:
            def body(i, carry):
                copy_row(x_ref, o_ref, i)
                return carry
            lax.fori_loop(0, tb, body, 0)

    return kernel


def channel_shuffle(x: jax.Array, groups: int) -> jax.Array:
    """Pallas implementation of ChannelShuffle.forward for NCHW input."""
    b, c, h, w = x.shape
    assert c % groups == 0, "channels must be divisible by groups"
    hw = h * w
    itemsize = jnp.dtype(x.dtype).itemsize

    x_flat = x.reshape(b, c, hw)

    # ---- generation-aware block budget -------------------------------------
    vmem_cap = _vmem_capacity_bytes()
    if vmem_cap >= 96 * 1024 * 1024:          # v5e / v6e: 128 MiB physical VMEM
        max_block_bytes = 8 * 1024 * 1024
        vmem_limit = 64 * 1024 * 1024
    else:                                     # v7x: 64 MiB physical VMEM
        max_block_bytes = 4 * 1024 * 1024
        vmem_limit = 32 * 1024 * 1024
    # 2 (in+out) x 2 (double buffer) x max_block_bytes always fits vmem_limit.

    # ---- HW (lane) tiling ----------------------------------------------------
    # Tile HW in 128-lane multiples when possible; otherwise use the full-dim
    # exception (required when HW is not 128-divisible, e.g. 7x7 maps).
    max_hw_tile = 1024  # keeps each gathered slab <= 8 f32 vregs (no spills)
    if hw % 128 == 0 and hw > max_hw_tile:
        hw_tile = max_hw_tile
        # Shrink further (staying a multiple of 128) if one batch row of all
        # channels would still blow the per-block budget.
        while hw_tile > 128 and c * hw_tile * itemsize > max_block_bytes:
            hw_tile //= 2
    else:
        hw_tile = hw
    num_hw_tiles = _cdiv(hw, hw_tile)

    # ---- batch tiling (cdiv; partial last block is fine for a copy) --------
    bytes_per_batch_row = c * hw_tile * itemsize
    tb = max(1, min(b, max_block_bytes // max(bytes_per_batch_row, 1)))
    # Guarantee a handful of grid steps when the batch allows it: gives v7x's
    # two TensorCores >=2 steps each and lets the pipeline overlap the input
    # DMA of step i+1 with the writeback of step i.  Per-step overhead is
    # ~0.35 us, so this costs nothing on single-core chips either.
    target_steps = 4
    if b > 1 and _cdiv(b, tb) * num_hw_tiles < target_steps:
        needed_batch_tiles = min(b, max(1, _cdiv(target_steps, num_hw_tiles)))
        tb = max(1, _cdiv(b, needed_batch_tiles))
    num_batch_tiles = _cdiv(b, tb)

    grid = (num_batch_tiles, num_hw_tiles)

    # Sublane packing: 8 channels/vreg for f32, 16 for bf16, 32 for int8.
    ctile = max(1, min(c, 32 // itemsize))
    unroll_batch = tb <= 8
    kernel = _make_shuffle_kernel(c, groups, ctile, tb, unroll_batch)

    out_flat = pl.pallas_call(
        kernel,
        out_shape=jax.ShapeDtypeStruct((b, c, hw), x.dtype),
        grid_spec=pltpu.PrefetchScalarGridSpec(
            num_scalar_prefetch=0,
            grid=grid,
            # Block: (tb, C, hw_tile).  Sublane dim = full C (full-dim
            # exception); lane dim = multiple of 128 or full HW.
            in_specs=[pl.BlockSpec((tb, c, hw_tile), lambda i, j: (i, 0, j))],
            out_specs=pl.BlockSpec((tb, c, hw_tile), lambda i, j: (i, 0, j)),
        ),
        compiler_params=pltpu.CompilerParams(
            dimension_semantics=("parallel", "parallel"),
            vmem_limit_bytes=vmem_limit,
        ),
        cost_estimate=pl.CostEstimate(
            flops=0,
            transcendentals=0,
            bytes_accessed=2 * b * c * hw * itemsize,
        ),
    )(x_flat)

    return out_flat.reshape(b, c, h, w)


def channel_shuffle_ref(x: jax.Array, groups: int) -> jax.Array:
    """Pure-JAX reference matching the PyTorch forward exactly."""
    b, c, h, w = x.shape
    cpg = c // groups
    y = x.reshape(b, groups, cpg, h, w)
    y = jnp.transpose(y, (0, 2, 1, 3, 4))
    return y.reshape(b, c, h, w)


if __name__ == "__main__":
    key = jax.random.PRNGKey(0)

    # Case 1: shapes implied by the module harness (HW a multiple of 128).
    B, C, H, W = 2, 4, 16, 16
    GROUPS = 2
    x = jax.random.normal(key, (B, C, H, W), dtype=jnp.float32)
    out = jax.block_until_ready(channel_shuffle(x, GROUPS))
    ref = channel_shuffle_ref(x, GROUPS)
    assert out.shape == (B, C, H, W)
    assert out.dtype == x.dtype
    assert jnp.array_equal(out, ref), "Pallas ChannelShuffle mismatch vs reference (case 1)"

    # Case 2: HW not a multiple of 128 (real ResNet-style 7x7 map) exercises
    # the full-dim lane block path.
    x2 = jax.random.normal(jax.random.PRNGKey(0), (2, 8, 7, 7), dtype=jnp.float32)
    out2 = jax.block_until_ready(channel_shuffle(x2, 4))
    ref2 = channel_shuffle_ref(x2, 4)
    assert jnp.array_equal(out2, ref2), "Pallas ChannelShuffle mismatch vs reference (case 2)"

    # Case 3: larger map with HW-tiling + partial (cdiv) batch blocks.
    x3 = jax.random.normal(jax.random.PRNGKey(0), (3, 8, 32, 64), dtype=jnp.float32)
    out3 = jax.block_until_ready(channel_shuffle(x3, 2))
    ref3 = channel_shuffle_ref(x3, 2)
    assert jnp.array_equal(out3, ref3), "Pallas ChannelShuffle mismatch vs reference (case 3)"

    print("KERNEL_OK")
</pallas_src>

<mosaic_0001>
module attributes {stable_mosaic.version = 11 : i64} {
  func.func @kernel(%arg0: i32, %arg1: i32, %arg2: memref<1x4x256xf32, #tpu.memory_space<vmem>>, %arg3: memref<1x4x256xf32, #tpu.memory_space<vmem>>) attributes {dimension_semantics = [#tpu.dimension_semantics<parallel>, #tpu.dimension_semantics<parallel>], iteration_bounds = array<i64: 2, 1>, scalar_prefetch = 0 : i64, scratch_operands = 0 : i64, tpu.core_type = #tpu.core_type<tc>, window_params = [{transform_indices = @transform_0, window_bounds = array<i64: 1, 4, 256>}, {transform_indices = @transform_1, window_bounds = array<i64: 1, 4, 256>}]} {
    %c0 = arith.constant 0 : index
    %c0_0 = arith.constant 0 : index
    %c0_1 = arith.constant 0 : index
    %0 = vector.load %arg2[%c0, %c0_0, %c0_1] : memref<1x4x256xf32, #tpu.memory_space<vmem>>, vector<1x1x256xf32>
    %c0_2 = arith.constant 0 : index
    %c2 = arith.constant 2 : index
    %c0_3 = arith.constant 0 : index
    %1 = vector.load %arg2[%c0_2, %c2, %c0_3] : memref<1x4x256xf32, #tpu.memory_space<vmem>>, vector<1x1x256xf32>
    %c0_4 = arith.constant 0 : index
    %c1 = arith.constant 1 : index
    %c0_5 = arith.constant 0 : index
    %2 = vector.load %arg2[%c0_4, %c1, %c0_5] : memref<1x4x256xf32, #tpu.memory_space<vmem>>, vector<1x1x256xf32>
    %c0_6 = arith.constant 0 : index
    %c3 = arith.constant 3 : index
    %c0_7 = arith.constant 0 : index
    %3 = vector.load %arg2[%c0_6, %c3, %c0_7] : memref<1x4x256xf32, #tpu.memory_space<vmem>>, vector<1x1x256xf32>
    %4 = tpu.concatenate %0, %1, %2, %3 in 1 : vector<1x1x256xf32>, vector<1x1x256xf32>, vector<1x1x256xf32>, vector<1x1x256xf32> -> vector<1x4x256xf32>
    %c0_8 = arith.constant 0 : index
    %c0_9 = arith.constant 0 : index
    %c0_10 = arith.constant 0 : index
    %5 = vector.load %arg3[%c0_8, %c0_9, %c0_10] : memref<1x4x256xf32, #tpu.memory_space<vmem>>, vector<1x4x256xf32>
    tpu.vector_store %arg3[%c0_8, %c0_9, %c0_10], %4 {strides = array<i32>} : memref<1x4x256xf32, #tpu.memory_space<vmem>>, vector<1x4x256xf32>,
    return
  }
  func.func @transform_0(%arg0: i32, %arg1: i32) -> (i32, i32, i32) {
    %c0_i32 = arith.constant 0 : i32
    %c0_i32_0 = arith.constant 0 : i32
    return %arg0, %c0_i32, %arg1 : i32, i32, i32
  }
  func.func @transform_1(%arg0: i32, %arg1: i32) -> (i32, i32, i32) {
    %c0_i32 = arith.constant 0 : i32
    %c0_i32_0 = arith.constant 0 : i32
    return %arg0, %c0_i32, %arg1 : i32, i32, i32
  }
}

</mosaic_0001>

<bundles_post_ra>
// kernel: tpu_custom_call.1
= control target key start
LH: loop header
LB: loop body
LE: loop exit
PB: predicated region body
PF: predicated region fallthrough
CT: control target
= control target key end

     0   :  { %6 = vsyncpa [#allocation3], 0  ;;  %s633_s0 = inlined_call_operand.hbm [shape: f32[2,4,256], index: 0, kind: input, shape index: {}]   ;;  %s634_s1 = inlined_call_operand.hbm [shape: f32[2,4,256], index: 1, kind: output, shape index: {}]  }
   0x1   :  { %8 = vsyncpa [#allocation3 + $0x1], 0 }
   0x2   :  { %9 = vsyncpa [#allocation4], 0 }
   0x3   :  { %11 = vsyncpa [#allocation4 + $0x1], 0  ;;  %s507_s6 = smov 0   ;;  %s509_s7 = smov 0  }
   0x4   :  { %s511_s8 = smov 0   ;;  %s513_s9 = smov 0  }
   0x5   :  { %s515_s10 = smov 0   ;;  %s517_s11 = smov 0  }
   0x6 LB: > { %s301_s12 = sadd.s32 4294967295, %s495_s11   ;;  %s302_s13 = sadd.s32 4294967294, %s495_s11   ;;  %s495_s11 = sphi %s517_s11, %s17_s11   ;;  %s491_s10 = sphi %s515_s10, %s643_s10   ;;  %s487_s9 = sphi %s513_s9, %s642_s9   ;;  %s483_s8 = sphi %s511_s8, %s641_s8   ;;  %s479_s7 = sphi %s509_s7, %s640_s7   ;;  %s475_s6 = sphi %s507_s6, %s639_s6  }
   0x7   : > { %s29_s14 = sadd.s32 1, %s491_s10  ;;  %s38_s15 = sadd.s32 1, %s483_s8 }
   0x8   : > { %p31_p0 = scmp.ge.s32.totalorder %s29_s14, 2  ;;  %p45_p1 = scmp.ne.s32.totalorder %s483_s8, %s479_s7 }
   0x9   : > { %p46_p2 = scmp.eq.s32.totalorder %s495_s11, 0  ;;  %p51_p3 = scmp.ne.s32.totalorder %s479_s7, %s475_s6 }
   0xa   : > { %s645_s14 = smov (%p31_p0, %s29_s14), 0  ;;  %p52_p5 = scmp.eq.s32.totalorder %s301_s12, 0 }
   0xb   : > { %p548_p4 = por %p46_p2, %p45_p1  ;;  %s33_s17 = ssub.s32 %s491_s10, %s645_s14 }
   0xc   : > { %p77_p6 = scmp.eq.s32.totalorder %s301_s12, 1  ;;  %p36_p7 = scmp.eq.s32.totalorder %s33_s17, 0 }
   0xd   : > { %p554_p8 = por %p52_p5, %p51_p3  ;;  %p83_p10 = scmp.eq.s32.totalorder %s302_s13, 1 }
   0xe   : > { %p558_p9 = por %p77_p6, %p45_p1  ;;  %p304_p12 = scmp.ge.s32.totalorder %s495_s11, 2 }
   0xf   : > { %s563_s20 = scalar_select %p36_p7, %s483_s8, %s38_s15  }
  0x10   : > { %p565_p11 = por %p83_p10, %p51_p3  ;;  %p333_p13 = scmp.lt.s32.totalorder %s495_s11, 2 }
  0x11   : > { %s103_s22 = sand.u32 1, %s483_s8   ;;  %s319_s24 = sshll.u32 %s491_s10, 3 }
  0x12   : > { %s305_s23 = sshll.u32 %s103_s22, 3  ;;  %s114_s27 = scalar_lea.hbm %s633_s0, %s319_s24 }
  0x13   : > { %s107_s28 = scalar_lea.vmem [#allocation2], %s305_s23  ;;  %s116_s30 = sshll.u32 %s114_s27, 4  ;;  %s117_s30 = int_to_ptr.hbm [resolvable:$true] %s116_s30 }
  0x14   : > { %s118_s29 = sshll.u32 %s107_s28, 4  ;;  %p326_p0 = pnand %p333_p13, %p548_p4  ;;  %s119_s29 = int_to_ptr.vmem [resolvable:$true] %s118_s29 }
  0x15   : > { %p308_p1 = scmp.ge.s32.totalorder %s495_s11, 1  ;;  %p123_p2 = scmp.lt.s32.totalorder %s495_s11, 3 }
  0x16   : > { %s104_s2 = scalar_lea.sflag [#allocation3], %s103_s22 }
  0x17   : > { %328 = dma.hbm_to_vmem [thread:$0]  (!%p326_p0), %s117_s30, 128, %s119_s29, %s104_s2  }
  0x18   : > { %p124_p3 = pnand %p308_p1, %p123_p2 }
  0x19   : > { %s581_s3 = sand.u32 (!%p124_p3), 1, %s479_s7  }
  0x1a   : > { %127 = sbr.rel (%p124_p3) target bundleno = 48 (0x30), region = 24  ;;  %s309_s4 = sshll.u32 (!%p124_p3), %s581_s3, 3 }
  0x1b   : > { %s130_s5 = scalar_lea.sflag (!%p124_p3), [#allocation3], %s581_s3  ;;  %s133_s12 = scalar_lea.vmem (!%p124_p3), [#allocation2], %s309_s4 }
  0x1f   : > { %466 = dma.done.wait (%p554_p8), %s130_s5, 128  }
  0x20   : > { %468 = vsyncadd (%p554_p8), %s130_s5, 4294967168  ;;  %vm182_vm0 = vcmask 1040384   ;;  %vm185_vm1 = vcmask 1041408   ;;  %vm188_vm2 = vcmask 1042432   ;;  %s320_s13 = sshll.u32 %s487_s9, 3  ;;  %s152_s9 = scalar_lea.vmem [#allocation5], %s309_s4 }
  0x21   : > { %v155_v0 = vld [vmem:[%s133_s12] ss:$4 sm:$0x3]  ;;  %v311_v1 = vld [vmem:[%s133_s12 + $0x2] ss:$4 sm:$0x3]  ;;  %s212_s17 = scalar_lea.hbm %s634_s1, %s320_s13 }
  0x22   : > { %v312_v2 = vld [vmem:[%s133_s12 + $0x1] ss:$4 sm:$0x3]  ;;  %v313_v3 = vld [vmem:[%s133_s12 + $0x3] ss:$4 sm:$0x3] }
  0x23   : > { %v163_v4 = vperm.slane %v155_v0, 0  ;;  %v164_v5 = vperm.slane %v155_v0, 1  ;;  %v168_v6 = vperm.slane %v311_v1, 0  ;;  %v169_v7 = vperm.slane %v311_v1, 1  ;;  %s214_s18 = sshll.u32 %s152_s9, 4  ;;  %s216_s22 = sshll.u32 %s212_s17, 4  ;;  %s215_s18 = int_to_ptr.vmem [resolvable:$true] %s214_s18  ;;  %s217_s22 = int_to_ptr.hbm [resolvable:$true] %s216_s22 }
  0x24   : > { %v173_v8 = vperm.slane %v312_v2, 0  ;;  %v174_v9 = vperm.slane %v312_v2, 1  ;;  %v178_v10 = vperm.slane %v313_v3, 0  ;;  %v179_v11 = vperm.slane %v313_v3, 1  ;;  %s199_s23 = scalar_lea.sflag [#allocation4], %s581_s3  ;;  %s427_s24 = sshra.s32 %s217_s22, 4  ;;  %s428_s24 = int_to_ptr.hbm [resolvable:$true] %s427_s24 }
  0x25   : > { %v183_v12 = vsel %vm182_vm0, %v163_v4, %v168_v6  ;;  %v184_v13 = vsel %vm182_vm0, %v164_v5, %v169_v7  ;;  %vm194_vm3 = vcmask 1043456   ;;  %s429_s25 = scalar_lea.hbm %s428_s24, 8  ;;  %s433_s28 = scalar_lea.hbm %s634_s1, 16 }
  0x26   : > { %v186_v14 = vsel %vm185_vm1, %v183_v12, %v173_v8  ;;  %v187_v15 = vsel %vm185_vm1, %v184_v13, %v174_v9  ;;  %p430_p4 = scmp.ne.s32.totalorder %s428_s24, %s429_s25  ;;  %p434_p7 = scmp.lt.s32.totalorder %s428_s24, %s634_s1 }
  0x27   : > { %v189_v16 = vsel %vm188_vm2, %v186_v14, %v178_v10  ;;  %v190_v17 = vsel %vm188_vm2, %v187_v15, %v179_v11  ;;  %p435_p8 = scmp.lt.s32.totalorder %s433_s28, %s429_s25 }
  0x28   : > { %v193_v18 = vrot.slane %v190_v17, 4  ;;  %p431_p5 = pnand %p430_p4, %p558_p9 }
  0x29   : > { %p436_p10 = por %p435_p8, %p434_p7 }
  0x2a   : > { %v195_v19 = vsel %vm194_vm3, %v189_v16, %v193_v18  ;;  %p432_p6 = pneg %p431_p5 }
  0x2b   : > { %197 = vst [vmem:[%s152_s9] sm:$0xff] %v195_v19 }
  0x2c   : > { %p437_p13 = pnand %p436_p10, %p432_p6 }
  0x2e   : > { %440 = shalt.err (!%p437_p13)
}
  0x2f   : > { %323 = dma.vmem_to_hbm [thread:$0]  (%p558_p9), %s215_s18, 128, %s217_s22, %s199_s23  }
  0x30 PF: > { %s228_s2 = sand.u32 1, %s475_s6   ;;  %p330_p0 = pnand %p304_p12, %p565_p11 }
  0x31   : > { %s229_s3 = scalar_lea.sflag [#allocation4], %s228_s2 }
  0x32   : > { %p331_p1 = pneg %p330_p0 }
  0x34   : > { %470 = dma.done.wait (%p331_p1), %s229_s3, 128  }
  0x35   : > { %472 = vsyncadd (%p331_p1), %s229_s3, 4294967168  ;;  %s17_s11 = sadd.s32 1, %s495_s11   ;;  %s639_s6 = smov %s479_s7 }
  0x36   : > { %p14_p2 = scmp.ge.s32.totalorder %s17_s11, 4   ;;  %s640_s7 = smov %s483_s8 }
  0x37   : > { %s641_s8 = smov %s563_s20  ;;  %s642_s9 = smov %s491_s10 }
  0x38   : > { %s643_s10 = smov %s645_s14  ;;  %16 = sbr.rel (!%p14_p2) target bundleno = 6 (0x6), region = 72 }
  0x3d   :  { %235 = vsyncpa [#allocation3], 1 }
  0x3e   :  { %237 = vsyncpa [#allocation3 + $0x1], 1 }
  0x3f   :  { %238 = vsyncpa [#allocation4], 1 }
  0x40   :  { %240 = vsyncpa [#allocation4 + $0x1], 1 }

</bundles_post_ra>
